<compile_context>
chip_gen: v7x
topology: tpu7x:2x2x1
jax: 0.10.0
libtpu: 0.0.40
codegen_flags: <defaults>
</compile_context>

<pallas_src>
import jax
import jax.numpy as jnp
from jax.experimental import pallas as pl
from jax.experimental.pallas import tpu as pltpu


def _round_up(x, m):
    return ((x + m - 1) // m) * m


def _beta_regression_kernel(b0_ref, x_ref, w_ref, mu_ref):
    # b0_ref: SMEM (1,)              intercept scalar
    # x_ref : VMEM (tile_rows, feat) streamed grouped-row tile (feat = g*D)
    # w_ref : VMEM (feat, g)         block-diagonal weight, resident across grid
    # mu_ref: VMEM (tile_rows, g)
    logits = jnp.dot(
        x_ref[...], w_ref[...],
        preferred_element_type=jnp.float32,
        precision=jax.lax.Precision.HIGHEST,
    ) + b0_ref[0]
    # exp goes to the EUP; exp(-logits) overflow for very negative logits gives
    # mu = 0 exactly (the correct limit, no NaN).
    mu_ref[...] = 1.0 / (1.0 + jnp.exp(-logits))


def _auto_tile_rows(rows, row_in_bytes):
    """Rows per grid step for a bandwidth-bound kernel (row_in_bytes = padded)."""
    # ~8 MiB of lane-padded x per tile reaches >=85% of the HBM roofline on
    # v5e/v6e/v7x; double-buffered in+out blocks then stay < ~36 MiB, safely
    # inside v7x's 64 MiB/TC VMEM (v5e/v6e have 128 MiB).
    budget = 8 * 1024 * 1024
    tile = max(budget // row_in_bytes, 8)
    tile = min(tile, rows)
    # Prefer >= ~8 grid steps (pipeline overlap; lets v7x's two TensorCores
    # split the grid), but never shrink below ~512 KiB per tile where the
    # ~0.35 us per-step overhead starts to dominate.
    min_steps = 8
    floor = min(max((512 * 1024) // row_in_bytes, 8), rows)
    if tile * min_steps > rows:
        tile = min(max(rows // min_steps, floor), rows)
    if tile < rows:
        tile = max((tile // 8) * 8, 8)
        tile = min(tile, rows)
    else:
        tile = rows
    return int(tile)


def beta_regression_forward(x, beta, *, tile_rows=None):
    """x: (N, D) f32, beta: (D+1, 1) f32 -> mu: (N, 1) f32."""
    N, D = x.shape
    assert beta.shape == (D + 1, 1)

    x = x.astype(jnp.float32)
    beta = beta.astype(jnp.float32)
    b0 = beta[0].reshape((1,))            # intercept scalar (SMEM)
    w = beta[1:, 0]                       # (D,)

    # Small-D row grouping (full 128-lane utilization of the streamed tile).
    if D <= 128 and 128 % D == 0 and N % (128 // D) == 0:
        g = 128 // D
    else:
        g = 1
    rows = N // g
    feat = g * D

    if g > 1:
        x_view = x.reshape(rows, feat)    # free row-major view
        # Block-diagonal (feat, g): column j holds w in rows j*D:(j+1)*D.
        w_mat = (jnp.eye(g, dtype=jnp.float32)[:, None, :]
                 * w[None, :, None]).reshape(feat, g)
    else:
        x_view = x
        w_mat = w.reshape(D, 1)

    # VMEM footprints account for lane padding: an f32 block row occupies
    # roundup(lastdim, 128)*4 bytes, not lastdim*4.
    row_in_bytes = _round_up(feat, 128) * 4
    row_out_bytes = _round_up(g, 128) * 4

    if tile_rows is None:
        tile_rows = _auto_tile_rows(rows, row_in_bytes)
    tile_rows = int(min(tile_rows, rows))
    if tile_rows != rows:
        assert tile_rows % 8 == 0 and tile_rows >= 8, \
            "tile_rows must be a multiple of 8 (or equal to the row count)"

    num_tiles = pl.cdiv(rows, tile_rows)

    # Double-buffered x + mu blocks, resident weight, plus headroom.
    vmem_need = (2 * tile_rows * (row_in_bytes + row_out_bytes)
                 + 2 * _round_up(feat, 8) * _round_up(g, 128) * 4)
    vmem_limit = int(max(vmem_need + 4 * 1024 * 1024, 16 * 1024 * 1024))

    out = pl.pallas_call(
        _beta_regression_kernel,
        out_shape=jax.ShapeDtypeStruct((rows, g), jnp.float32),
        grid=(num_tiles,),
        in_specs=[
            pl.BlockSpec(memory_space=pltpu.MemorySpace.SMEM),   # b0 scalar
            pl.BlockSpec((tile_rows, feat), lambda i: (i, 0)),   # x tile (streamed)
            pl.BlockSpec((feat, g), lambda i: (0, 0)),           # weight (resident)
        ],
        out_specs=pl.BlockSpec((tile_rows, g), lambda i: (i, 0)),
        compiler_params=pltpu.CompilerParams(
            dimension_semantics=("parallel",),                    # megacore on v7x
            vmem_limit_bytes=vmem_limit,
        ),
        cost_estimate=pl.CostEstimate(
            flops=2 * rows * feat * g,
            transcendentals=N,
            bytes_accessed=N * D * 4 + N * 4 + (feat * g + 1) * 4,
        ),
    )(b0, x_view, w_mat)

    # (rows, g) is row-major contiguous with (N, 1): free reshape, no slicing.
    return out.reshape(N, 1)


if __name__ == "__main__":
    key = jax.random.PRNGKey(0)

    def reference(x, beta):
        ones = jnp.ones((x.shape[0], 1), jnp.float32)
        xw = jnp.concatenate([ones, x], axis=1)
        return jax.nn.sigmoid(
            jnp.matmul(xw, beta, precision=jax.lax.Precision.HIGHEST))

    # Small shapes consistent with the module (hidden D=32 default); explicit
    # tile_rows values are chosen so the DMA pipeline and ragged last block
    # are exercised; None exercises the auto tile sizing.
    configs = [
        (1024, 32, 64),   # grouped path (g=4), 4 grid steps
        (600, 32, 64),    # grouped path, ragged last block
        (200, 48, 64),    # fallback path (128 % 48 != 0 -> g=1), ragged last block
        (514, 32, None),  # N not divisible by g -> fallback path, auto tiling
        (512, 32, None),  # grouped path, auto tiling
    ]
    for idx, (N, D, tr) in enumerate(configs):
        kx, kb = jax.random.split(jax.random.fold_in(key, idx))
        x = jax.random.normal(kx, (N, D), dtype=jnp.float32)
        beta = jax.random.normal(kb, (D + 1, 1), dtype=jnp.float32)

        mu = beta_regression_forward(x, beta, tile_rows=tr)
        jax.block_until_ready(mu)

        mu_ref = reference(x, beta)
        assert mu.shape == (N, 1)
        assert jnp.allclose(mu, mu_ref, atol=1e-5, rtol=1e-5), \
            f"mismatch vs reference for config {idx} (N={N}, D={D}, tile={tr})"

    # log_phi / phi() / negative_log_likelihood() are not part of forward().
    # TODO(synk): negative_log_likelihood (lgamma-based Beta NLL) not implemented.
    print("KERNEL_OK")
</pallas_src>

<mosaic_0001>
module attributes {stable_mosaic.version = 11 : i64} {
  func.func @_beta_regression_kernel(%arg0: i32, %arg1: memref<1xf32, #tpu.memory_space<smem>>, %arg2: memref<64x128xf32, #tpu.memory_space<vmem>>, %arg3: memref<128x4xf32, #tpu.memory_space<vmem>>, %arg4: memref<64x4xf32, #tpu.memory_space<vmem>>) attributes {dimension_semantics = [#tpu.dimension_semantics<parallel>], iteration_bounds = array<i64: 4>, scalar_prefetch = 0 : i64, scratch_operands = 0 : i64, tpu.core_type = #tpu.core_type<tc>, window_params = [{transform_indices = @transform_0, window_bounds = array<i64: 1>}, {transform_indices = @transform_1, window_bounds = array<i64: 64, 128>}, {pipeline_mode = #tpu.pipeline_mode<synchronous>, transform_indices = @transform_2, window_bounds = array<i64: 128, 4>}, {transform_indices = @transform_3, window_bounds = array<i64: 64, 4>}]} {
    %c0 = arith.constant 0 : index
    %c0_0 = arith.constant 0 : index
    %0 = vector.load %arg2[%c0, %c0_0] : memref<64x128xf32, #tpu.memory_space<vmem>>, vector<64x128xf32>
    %c0_1 = arith.constant 0 : index
    %c0_2 = arith.constant 0 : index
    %1 = vector.load %arg3[%c0_1, %c0_2] : memref<128x4xf32, #tpu.memory_space<vmem>>, vector<128x4xf32>
    %cst = arith.constant dense<0.000000e+00> : vector<64x4xf32>
    %2 = tpu.matmul %0, %1, %cst {dimension_numbers = #tpu.dot_dimension_numbers<[1], [0], [0], [1], [0, 0, 1, 1], [], []>, precision = #tpu.contract_precision<fp32>} : vector<64x128xf32>, vector<128x4xf32>, vector<64x4xf32> -> vector<64x4xf32>
    %c0_3 = arith.constant 0 : index
    %3 = memref.load %arg1[%c0_3] : memref<1xf32, #tpu.memory_space<smem>>
    %4 = vector.broadcast %3 : f32 to vector<64x4xf32>
    %5 = arith.addf %2, %4 : vector<64x4xf32>
    %cst_4 = arith.constant 0.000000e+00 : f32
    %6 = vector.broadcast %cst_4 : f32 to vector<64x4xf32>
    %7 = arith.subf %6, %5 : vector<64x4xf32>
    %8 = math.exp %7 : vector<64x4xf32>
    %cst_5 = arith.constant 1.000000e+00 : f32
    %9 = vector.broadcast %cst_5 : f32 to vector<64x4xf32>
    %10 = arith.addf %9, %8 : vector<64x4xf32>
    %cst_6 = arith.constant 1.000000e+00 : f32
    %11 = vector.broadcast %cst_6 : f32 to vector<64x4xf32>
    %12 = arith.divf %11, %10 : vector<64x4xf32>
    %c0_7 = arith.constant 0 : index
    %c0_8 = arith.constant 0 : index
    %13 = vector.load %arg4[%c0_7, %c0_8] : memref<64x4xf32, #tpu.memory_space<vmem>>, vector<64x4xf32>
    tpu.vector_store %arg4[%c0_7, %c0_8], %12 {strides = array<i32>} : memref<64x4xf32, #tpu.memory_space<vmem>>, vector<64x4xf32>,
    return
  }
  func.func @transform_0(%arg0: i32) -> i32 {
    %c0_i32 = arith.constant 0 : i32
    %c0_i32_0 = arith.constant 0 : i32
    return %c0_i32 : i32
  }
  func.func @transform_1(%arg0: i32) -> (i32, i32) {
    %c0_i32 = arith.constant 0 : i32
    %c0_i32_0 = arith.constant 0 : i32
    return %arg0, %c0_i32 : i32, i32
  }
  func.func @transform_2(%arg0: i32) -> (i32, i32) {
    %c0_i32 = arith.constant 0 : i32
    %c0_i32_0 = arith.constant 0 : i32
    %c0_i32_1 = arith.constant 0 : i32
    return %c0_i32, %c0_i32_0 : i32, i32
  }
  func.func @transform_3(%arg0: i32) -> (i32, i32) {
    %c0_i32 = arith.constant 0 : i32
    %c0_i32_0 = arith.constant 0 : i32
    return %arg0, %c0_i32 : i32, i32
  }
}

</mosaic_0001>

<bundles_post_ra>
// kernel: tpu_custom_call.1
= control target key start
LH: loop header
LB: loop body
LE: loop exit
PB: predicated region body
PF: predicated region fallthrough
CT: control target
= control target key end

     0   :  { %s2633_s0 = inlined_call_operand.<no memory space> [shape: f32[1], index: 0, kind: input, shape index: {}]   ;;  %s2634_s1 = inlined_call_operand.hbm [shape: f32[256,128], index: 1, kind: input, shape index: {}]   ;;  %s2635_s2 = inlined_call_operand.vmem [shape: f32[128,4], index: 2, kind: input, shape index: {}]   ;;  %s2636_s3 = inlined_call_operand.vmem [shape: f32[256,4], index: 3, kind: output, shape index: {}]  }
   0x1   :  { %8 = sst [smem:[#allocation2]] %s2633_s0 }
   0x2   :  { %9 = vsyncpa [#allocation4], 0 }
   0x3   :  { %11 = vsyncpa [#allocation4 + $0x1], 0  ;;  %s2113_s14 = smov 0   ;;  %s2115_s15 = smov 0  }
   0x4   :  { %s2117_s16 = smov 0   ;;  %s2119_s17 = smov 0  }
   0x5 LB: > { %s1286_s0 = sadd.s32 4294967295, %s2085_s17   ;;  %s2133_s18 = sadd.s32 1, %s2085_s17   ;;  %s2085_s17 = sphi %s2119_s17, %s2688_s17   ;;  %s2081_s16 = sphi %s2117_s16, %s2687_s16   ;;  %s2077_s15 = sphi %s2115_s15, %s2686_s15   ;;  %s2073_s14 = sphi %s2113_s14, %s2685_s14  }
   0x6   : > { %s42_s19 = ssub.s32 %s2085_s17, %s2133_s18  ;;  %s45_s20 = sadd.s32 1, %s2081_s16 }
   0x7   : > { %p43_p0 = scmp.eq.s32.totalorder %s42_s19, 0  ;;  %p52_p1 = scmp.ne.s32.totalorder %s2081_s16, %s2077_s15 }
   0x8   : > { %p53_p2 = scmp.eq.s32.totalorder %s2085_s17, 0  ;;  %p58_p3 = scmp.ne.s32.totalorder %s2077_s15, %s2073_s14 }
   0x9   : > { %s2143_s21 = scalar_select %p43_p0, %s2081_s16, %s45_s20  }
   0xa   : > { %p54_p4 = por %p53_p2, %p52_p1  ;;  %p59_p5 = scmp.eq.s32.totalorder %s1286_s0, 0 }
   0xb   : > { %p1954_p6 = scmp.lt.s32.totalorder %s2085_s17, 4  ;;  %s135_s23 = sand.u32 1, %s2081_s16  }
   0xc   : > { %p2148_p7 = por %p59_p5, %p58_p3  ;;  %s1290_s24 = sshll.u32 %s135_s23, 6 }
   0xd   : > { %s1299_s25 = sshll.u32 %s2085_s17, 10  ;;  %s139_s29 = scalar_lea.vmem [#allocation3], %s1290_s24 }
   0xe   : > { %s2157_s28 = scalar_lea.hbm %s2634_s1, %s1299_s25  ;;  %s146_s30 = sshll.u32 %s139_s29, 4  ;;  %s2159_s30 = int_to_ptr.vmem [resolvable:$true] %s146_s30 }
   0xf   : > { %p2161_p8 = pnand %p1954_p6, %p54_p4  ;;  %s2166_s5 = scalar_lea.sflag [#allocation4], %s135_s23 }
  0x10   : > { %s2021_s6 = scalar_lea.hbm %s2157_s28, 1024  ;;  %s2026_s9 = scalar_lea.hbm %s2634_s1, 4096 }
  0x11   : > { %p2022_p10 = scmp.ne.s32.totalorder %s2157_s28, %s2021_s6  ;;  %p2023_p11 = pneg %p2161_p8 }
  0x12   : > { %p2027_p0 = scmp.lt.u32.totalorder %s2157_s28, %s2634_s1  ;;  %p2028_p1 = scmp.lt.u32.totalorder %s2026_s9, %s2021_s6 }
  0x13   : > { %p2024_p12 = pnand %p2023_p11, %p2022_p10  ;;  %p2030_p3 = scmp.lt.u32.totalorder %s2021_s6, %s2157_s28 }
  0x14   : > { %p2029_p2 = por %p2028_p1, %p2027_p0 }
  0x15   : > { %p2025_p13 = pneg %p2024_p12 }
  0x16   : > { %p2031_p4 = por %p2030_p3, %p2029_p2 }
  0x18   : > { %p2032_p5 = pnand %p2031_p4, %p2025_p13 }
  0x1a   : > { %2035 = shalt.err (!%p2032_p5)
}
  0x1b   : > { %s2036_s12 = scalar_lea.vmem %s2159_s30, 1024  ;;  %s2087_s13 = smov [#allocation3]  }
  0x1c   : > { %p2037_p6 = scmp.ne.s32.totalorder %s2159_s30, %s2036_s12  ;;  %s2041_s14 = sshll.u32 %s2087_s13, 4  ;;  %s2042_s14 = int_to_ptr.vmem [resolvable:$false] %s2041_s14 }
  0x1d   : > { %s2043_s19 = scalar_lea.vmem %s2042_s14, 2048  ;;  %p2044_p9 = scmp.lt.s32.totalorder %s2159_s30, %s2042_s14 }
  0x1e   : > { %p2039_p10 = pnand %p2037_p6, %p2023_p11  ;;  %p2045_p0 = scmp.lt.s32.totalorder %s2043_s19, %s2036_s12 }
  0x20   : > { %p2040_p12 = pneg %p2039_p10  ;;  %p2046_p1 = por %p2045_p0, %p2044_p9 }
  0x22   : > { %p2047_p2 = pnand %p2046_p1, %p2040_p12 }
  0x24   : > { %2050 = shalt.err (!%p2047_p2)
}
  0x25   : > { %s2088_s20 = smov 128   ;;  %s2089_s23 = smov 8  }
  0x26   : > { %1953 = dma.hbm_to_vmem [thread:$0]  (!%p2161_p8), %s2157_s28, 1024, %s2159_s30, %s2166_s5, %s2088_s20, %s2088_s20, %s2089_s23  }
  0x27   : > { %p154_p11 = scmp.lt.s32.totalorder %s2085_s17, 5  ;;  %p2658_p13 = scmp.ge.s32.totalorder %s2085_s17, 1 }
  0x29   : > { %p155_p3 = pnand %p2658_p13, %p154_p11 }
  0x2b   : > { %158 = sbr.rel (%p155_p3) target bundleno = 415 (0x19f), region = 32 }
  0x32   : > { %s160_s24 = sand.u32 1, %s2077_s15  }
  0x33   : > { %s1294_s25 = sshll.u32 %s160_s24, 6  ;;  %s161_s26 = scalar_lea.sflag [#allocation4], %s160_s24 }
  0x34   : > { %s2198_s27 = scalar_lea.vmem [#allocation3], %s1294_s25 }
  0x35   : > { %2068 = dma.done.wait (%p2148_p7), %s161_s26, 1024  }
  0x36   : > { %2070 = vsyncadd (%p2148_p7), %s161_s26, 4294966272  ;;  %v202_v0 = vld [vmem:[%s2635_s2] sm:$0xff]  ;;  %v203_v1 = vld [vmem:[%s2635_s2 + $0x8] sm:$0xff]  ;;  %s1295_s11 = sshll.u32 %s1286_s0, 3  ;;  %vm1210_vm0 = vcmask 31744  }
  0x37   : > { %v204_v2 = vld [vmem:[%s2635_s2 + $0x10] sm:$0xff]  ;;  %v221_v3 = vand.u32 4294901760, %v202_v0  ;;  %v224_v4 = vand.u32 4294901760, %v203_v1  ;;  %v205_v5 = vld [vmem:[%s2635_s2 + $0x18] sm:$0xff]  ;;  %v2219_v7 = vld [vmem:[%s2635_s2 + $0x20] sm:$0xff]  ;;  %p189_p7 = scmp.lt.s32.totalorder %s1295_s11, 31 }
  0x38   : > { %v227_v6 = vand.u32 4294901760, %v204_v2  ;;  %v2224_v8 = vld [vmem:[%s2635_s2 + $0x28] sm:$0xff]  ;;  %v230_v9 = vand.u32 4294901760, %v205_v5  ;;  %v233_v11 = vand.u32 4294901760, %v2219_v7  ;;  %v2235_v14 = vld [vmem:[%s2635_s2 + $0x30] sm:$0xff]  ;;  %v2240_v15 = vld [vmem:[%s2635_s2 + $0x38] sm:$0xff] }
  0x39   : > { %v2226_v10 = vpack.c.bf16 %v224_v4, %v221_v3  ;;  %v236_v12 = vand.u32 4294901760, %v2224_v8  ;;  %v194_v16 = vld [vmem:[%s2198_s27] sm:$0xff]  ;;  %v239_v19 = vand.u32 4294901760, %v2235_v14  ;;  %v242_v20 = vand.u32 4294901760, %v2240_v15  ;;  %v2265_v22 = vld [vmem:[%s2635_s2 + $0x48] sm:$0xff]  ;;  %v2287_v29 = vld [vmem:[%s2635_s2 + $0x50] sm:$0xff] }
  0x3a   : > { %v2230_v13 = vpack.c.bf16 %v230_v9, %v227_v6  ;;  %v2247_v17 = vand.u32 4294901760, %v194_v16  ;;  %v2260_v21 = vld [vmem:[%s2635_s2 + $0x40] sm:$0xff]  ;;  %v195_v25 = vld [vmem:[%s2198_s27 + $0x8] sm:$0xff]  ;;  %v248_v28 = vand.u32 4294901760, %v2265_v22  ;;  %v2292_v30 = vld [vmem:[%s2635_s2 + $0x58] sm:$0xff]  ;;  %v2299_v34 = vsub.f32 %v202_v0, %v221_v3  ;;  %s2690_s11 = smov (!%p189_p7, %s1295_s11), 31 }
  0x3b   : > { %1709 = vmatprep.subr.bf16.mxu1 %v2226_v10  ;;  %1805 = vmatprep.subr.bf16.mxu0 %v2226_v10  ;;  %v2253_v18 = vpack.c.bf16 %v236_v12, %v233_v11  ;;  %v2280_v26 = vpack.c.bf16 %v242_v20, %v239_v19  ;;  %v245_v27 = vand.u32 4294901760, %v2260_v21  ;;  %v2295_v32 = vand.u32 4294901760, %v195_v25  ;;  %v2314_v38 = vld [vmem:[%s2635_s2 + $0x60] sm:$0xff]  ;;  %v2319_v39 = vld [vmem:[%s2635_s2 + $0x68] sm:$0xff]  ;;  %v2326_v41 = vld [vmem:[%s2635_s2 + $0x70] sm:$0xff]  ;;  %s1296_s17 = sshll.u32 %s2690_s11, 3 }
  0x3c   : > { %1711 = vmatpush3.bf16.msra.mxu1 %v2226_v10  ;;  %1807 = vmatpush3.bf16.msra.mxu0 %v2226_v10  ;;  %v2268_v23 = vsub.f32 %v194_v16, %v2247_v17  ;;  %v251_v36 = vand.u32 4294901760, %v2287_v29  ;;  %v254_v37 = vand.u32 4294901760, %v2292_v30  ;;  %v2321_v40 = vsub.f32 %v203_v1, %v224_v4  ;;  %v2331_v42 = vld [vmem:[%s2635_s2 + $0x78] sm:$0xff]  ;;  %v196_v45 = vld [vmem:[%s2198_s27 + $0x10] sm:$0xff]  ;;  %v198_v59 = vld [vmem:[%s2198_s27 + $0x20] sm:$0xff]  ;;  %s192_s13 = scalar_lea.vmem %s2636_s3, %s1296_s17 }
  0x3d   : > { %1713 = vmatprep.subr.bf16.mxu1 %v2230_v13  ;;  %1809 = vmatprep.subr.bf16.mxu0 %v2230_v13  ;;  %v2307_v35 = vpack.c.bf16 %v248_v28, %v245_v27  ;;  %v2334_v43 = vsub.f32 %v195_v25, %v2295_v32  ;;  %v2336_v44 = vsub.f32 %v204_v2, %v227_v6  ;;  %v2640_v46 = vand.u32 4294901760, %v2314_v38  ;;  %v197_v56 = vld [vmem:[%s2198_s27 + $0x18] sm:$0xff]  ;;  %v199_v6 = vld [vmem:[%s2198_s27 + $0x28] sm:$0xff] }
  0x3e   : > { %2659 = vst [vmem:[#allocation6_spill] sm:$0xff] %v2268_v23  ;;  %v303_v24 = vand.u32 4294901760, %v2268_v23  ;;  %v2639_v47 = vand.u32 4294901760, %v2319_v39  ;;  %v384_v48 = vand.u32 4294901760, %v2299_v34  ;;  %v2344_v49 = vsub.f32 %v205_v5, %v230_v9 }
  0x3f   : > { %2660 = vst [vmem:[#allocation7_spill] sm:$0xff] %v2307_v35  ;;  %v2352_v50 = vpack.c.bf16 %v254_v37, %v251_v36  ;;  %v391_v51 = vand.u32 4294901760, %v2321_v40  ;;  %v2356_v52 = vsub.f32 %v2219_v7, %v233_v11  ;;  %v2638_v53 = vand.u32 4294901760, %v2326_v41 }
  0x40   : > { %1715 = vmatpush3.bf16.msra.mxu1 %v2230_v13  ;;  %1811 = vmatpush3.bf16.msra.mxu0 %v2230_v13  ;;  %v304_v31 = vsub.f32 %v2268_v23, %v303_v24  ;;  %v2637_v54 = vand.u32 4294901760, %v2331_v42  ;;  %v2360_v55 = vand.u32 4294901760, %v196_v45  ;;  %v2641_v57 = vand.u32 4294901760, %v2334_v43 }
  0x41   : > { %1717 = vmatprep.subr.bf16.mxu1 %v2253_v18  ;;  %1813 = vmatprep.subr.bf16.mxu0 %v2253_v18  ;;  %2661 = vst [vmem:[#allocation8_spill] sm:$0xff] %v2352_v50  ;;  %v398_v58 = vand.u32 4294901760, %v2336_v44  ;;  %v2372_v60 = vpack.c.bf16 %v2639_v47, %v2640_v46  ;;  %v385_v61 = vsub.f32 %v2299_v34, %v384_v48  ;;  %v405_v62 = vand.u32 4294901760, %v2344_v49 }
  0x42   : > { %1608 = vmatprep.mubr.f32.mxu0 %v303_v24  ;;  %v305_v33 = vand.u32 4294901760, %v304_v31  ;;  %v392_v63 = vsub.f32 %v2321_v40, %v391_v51  ;;  %v2642_v0 = vand.u32 4294901760, %v2356_v52  ;;  %v2383_v1 = vsub.f32 %v2224_v8, %v236_v12  ;;  %v200_v12 = vld [vmem:[%s2198_s27 + $0x30] sm:$0xff] }
  0x43   : > { %2662 = vst [vmem:[#allocation9_spill] sm:$0xff] %v2372_v60  ;;  %v2385_v2 = vand.u32 4294901760, %v197_v56  ;;  %v2391_v3 = vpack.c.bf16 %v2637_v54, %v2638_v53  ;;  %v2394_v4 = vsub.f32 %v196_v45, %v2360_v55  ;;  %v2396_v5 = vand.u32 4294901760, %v198_v59 }
  0x44   : > { %1719 = vmatpush3.bf16.msra.mxu1 %v2253_v18  ;;  %1815 = vmatpush3.bf16.msra.mxu0 %v2253_v18  ;;  %v2399_v7 = vpack.c.bf16 %v391_v51, %v384_v48  ;;  %v314_v8 = vsub.f32 %v2334_v43, %v2641_v57  ;;  %v399_v9 = vsub.f32 %v2336_v44, %v398_v58  ;;  %v386_v16 = vand.u32 4294901760, %v385_v61 }
  0x45   : > { %1721 = vmatprep.subr.bf16.mxu1 %v2280_v26  ;;  %1817 = vmatprep.subr.bf16.mxu0 %v2280_v26  ;;  %2663 = vst [vmem:[#allocation10_spill] sm:$0xff] %v2391_v3  ;;  %2664 = vst [vmem:[#allocation11_spill] sm:$0xff] %v2394_v4  ;;  %v2408_v11 = vsub.f32 %v2235_v14, %v239_v19  ;;  %v406_v24 = vsub.f32 %v2344_v49, %v405_v62  ;;  %v393_v14 = vand.u32 4294901760, %v392_v63 }
  0x46   : > { %1476 = vmatprep.mubr.f32.mxu1 %v305_v33  ;;  %v2417_v25 = vsub.f32 %v2240_v15, %v242_v20  ;;  %v2420_v31 = vsub.f32 %v197_v56, %v2385_v2  ;;  %v2427_v19 = vsub.f32 %v2356_v52, %v2642_v0  ;;  %v419_v33 = vand.u32 4294901760, %v2383_v1 }
  0x47   : > { %v2430_v45 = vand.u32 4294901760, %v199_v6  ;;  %v2435_v15 = vsub.f32 %v2260_v21, %v245_v27  ;;  %v323_v20 = vand.u32 4294901760, %v2394_v4  ;;  %v2439_v48 = vsub.f32 %v198_v59, %v2396_v5 }
  0x48   : > { %1723 = vmatpush3.bf16.msra.mxu1 %v2280_v26  ;;  %1819 = vmatpush3.bf16.msra.mxu0 %v2280_v26  ;;  %2665 = vst [vmem:[#allocation12_spill] sm:$0xff] %v2420_v31  ;;  %v2441_v51 = vand.u32 4294901760, %v200_v12  ;;  %v2443_v56 = vpack.c.bf16 %v405_v62, %v398_v58  ;;  %v426_v61 = vand.u32 4294901760, %v2408_v11  ;;  %v333_v63 = vand.u32 4294901760, %v2420_v31  ;;  %v201_v62 = vld [vmem:[%s2198_s27 + $0x38] sm:$0xff]  ;;  %s218_s27 = sld [smem:[#allocation2]] }
  0x49   : > { %1725 = vmatprep.subr.bf16.mxu1 %v2307_v35  ;;  %1821 = vmatprep.subr.bf16.mxu0 %v2307_v35  ;;  %2666 = vst [vmem:[#allocation13_spill] sm:$0xff] %v2439_v48  ;;  %v2448_v54 = vsub.f32 %v199_v6, %v2430_v45  ;;  %v315_v21 = vand.u32 4294901760, %v314_v8  ;;  %v400_v27 = vand.u32 4294901760, %v399_v9  ;;  %v433_v59 = vand.u32 4294901760, %v2417_v25 }
  0x4a   : > { %v2456_v58 = vsub.f32 %v2265_v22, %v248_v28  ;;  %v1740_v6 = vpack.c.bf16 %v393_v14, %v386_v16  ;;  %v407_v53 = vand.u32 4294901760, %v406_v24  ;;  %v414_v47 = vand.u32 4294901760, %v2427_v19 }
  0x4b   : > { %2667 = vst [vmem:[#allocation14_spill] sm:$0xff] %v2448_v54  ;;  %v420_v46 = vsub.f32 %v2383_v1, %v419_v33  ;;  %v324_v9 = vsub.f32 %v2394_v4, %v323_v20  ;;  %v343_v57 = vand.u32 4294901760, %v2439_v48  ;;  %v2467_v22 = vsub.f32 %v200_v12, %v2441_v51 }
  0x4c   : > { %1727 = vmatpush3.bf16.msra.mxu1 %v2307_v35  ;;  %1823 = vmatpush3.bf16.msra.mxu0 %v2307_v35  ;;  %v427_v28 = vsub.f32 %v2408_v11, %v426_v61  ;;  %v334_v0 = vsub.f32 %v2420_v31, %v333_v63  ;;  %v353_v16 = vand.u32 4294901760, %v2448_v54  ;;  %v2472_v24 = vand.u32 4294901760, %v201_v62 }
  0x4d   : > { %1729 = vmatprep.subr.bf16.mxu1 %v2352_v50  ;;  %1825 = vmatprep.subr.bf16.mxu0 %v2352_v50  ;;  %v434_v14 = vsub.f32 %v2417_v25, %v433_v59  ;;  %v447_v19 = vand.u32 4294901760, %v2456_v58  ;;  %v2481_v12 = vsub.f32 %v2287_v29, %v251_v36  ;;  %v2486_v8 = vsub.f32 %v2292_v30, %v254_v37 }
  0x4e   : > { %v1744_v31 = vpack.c.bf16 %v407_v53, %v400_v27  ;;  %v421_v4 = vand.u32 4294901760, %v420_v46  ;;  %v2669_v23 = vand.u32 4294901760, %v2435_v15  ;;  %v325_v36 = vand.u32 4294901760, %v324_v9 }
  0x4f   : > { %v344_v35 = vsub.f32 %v2439_v48, %v343_v57  ;;  %v363_v30 = vand.u32 4294901760, %v2467_v22  ;;  %v2670_v37 = vand.u32 4294901760, %v2334_v43  ;;  %v428_v46 = vand.u32 4294901760, %v427_v28 }
  0x50   : > { %1731 = vmatpush3.bf16.msra.mxu1 %v2352_v50  ;;  %1827 = vmatpush3.bf16.msra.mxu0 %v2352_v50  ;;  %v2492_v50 = vsub.f32 %v201_v62, %v2472_v24  ;;  %v441_v29 = vsub.f32 %v2435_v15, %v2669_v23  ;;  %v335_v53 = vand.u32 4294901760, %v334_v0  ;;  %v435_v27 = vand.u32 4294901760, %v434_v14 }
  0x51   : > { %1733 = vmatprep.subr.bf16.mxu1 %v2372_v60  ;;  %1829 = vmatprep.subr.bf16.mxu0 %v2372_v60  ;;  %v448_v23 = vsub.f32 %v2456_v58, %v447_v19  ;;  %v454_v62 = vand.u32 4294901760, %v2481_v12  ;;  %v461_v9 = vand.u32 4294901760, %v2486_v8  ;;  %v2671_v0 = vand.u32 4294901760, %v2314_v38 }
  0x52   : > { %v345_v14 = vand.u32 4294901760, %v344_v35  ;;  %v442_v48 = vand.u32 4294901760, %v441_v29 }
  0x53   : > { %v2511_v28 = vsub.f32 %v2314_v38, %v2671_v0  ;;  %v1752_v38 = vpack.c.bf16 %v435_v27, %v428_v46  ;;  %v449_v0 = vand.u32 4294901760, %v448_v23 }
  0x54   : > { %1735 = vmatpush3.bf16.msra.mxu1 %v2372_v60  ;;  %1831 = vmatpush3.bf16.msra.mxu0 %v2372_v60 }
  0x55   : > { %1737 = vmatprep.subr.bf16.mxu1 %v2391_v3  ;;  %1833 = vmatprep.subr.bf16.mxu0 %v2391_v3  ;;  %v468_v35 = vand.u32 4294901760, %v2511_v28  ;;  %v1756_v46 = vpack.c.bf16 %v449_v0, %v442_v48  ;;  %v1856_v48 = vpack.c.bf16 %v461_v9, %v454_v62 }
  0x57   : > { %v469_v23 = vsub.f32 %v2511_v28, %v468_v35 }
  0x58   : > { %1739 = vmatpush3.bf16.msra.mxu1 %v2391_v3  ;;  %1835 = vmatpush3.bf16.msra.mxu0 %v2391_v3  ;;  %v2668_v3 = vand.u32 4294901760, %v2356_v52 }
  0x59   : > { %1741 = vmatprep.subr.bf16.mxu1 %v1740_v6  ;;  %1837 = vmatprep.subr.bf16.mxu0 %v2399_v7 }
  0x5a   : > { %v1844_v60 = vpack.c.bf16 %v419_v33, %v2668_v3  ;;  %v354_v3 = vsub.f32 %v2448_v54, %v353_v16  ;;  %v373_v33 = vand.u32 4294901760, %v2492_v50  ;;  %v1848_v54 = vpack.c.bf16 %v433_v59, %v426_v61 }
  0x5b   : > { %1477 = vmatmul.mubr.f32.vlgmr.msra.gmra.mrb[0].mxu1 %v315_v21  ;;  %1609 = vmatmul.mubr.f32.vlgmr.msra.gmra.mrb[0].mxu0 %v2670_v37  ;;  %v1748_v21 = vpack.c.bf16 %v421_v4, %v414_v47  ;;  %v364_v37 = vsub.f32 %v2467_v22, %v363_v30  ;;  %v2673_v61 = vand.u32 4294901760, %v2326_v41 }
  0x5c   : > { %1743 = vmatpush3.bf16.msra.mxu1 %v1740_v6  ;;  %1839 = vmatpush3.bf16.msra.mxu0 %v2399_v7  ;;  %v2672_v6 = vand.u32 4294901760, %v2319_v39  ;;  %v355_v47 = vand.u32 4294901760, %v354_v3  ;;  %v374_v4 = vsub.f32 %v2492_v50, %v373_v33 }
  0x5d   : > { %1745 = vmatprep.subr.bf16.mxu1 %v1744_v31  ;;  %1841 = vmatprep.subr.bf16.mxu0 %v2443_v56  ;;  %v365_v59 = vand.u32 4294901760, %v364_v37 }
  0x5e   : > { %v2516_v7 = vsub.f32 %v2319_v39, %v2672_v6  ;;  %1479 = vmatprep.mubr.f32.mxu1 %v325_v36  ;;  %1611 = vmatprep.mubr.f32.mxu0 %v323_v20  ;;  %v455_v39 = vsub.f32 %v2481_v12, %v454_v62  ;;  %v462_v36 = vsub.f32 %v2486_v8, %v461_v9  ;;  %v375_v29 = vand.u32 4294901760, %v374_v4 }
  0x5f   : > { %1480 = vmatmul.mubr.f32.gmra.mrb[2].mxu1 %v335_v53  ;;  %1612 = vmatmul.mubr.f32.gmra.mrb[2].mxu0 %v333_v63  ;;  %v2528_v63 = vsub.f32 %v2326_v41, %v2673_v61  ;;  %v2675_v53 = vand.u32 4294901760, %v2435_v15  ;;  %v1776_v4 = vpack.c.bf16 %v2344_v49, %v2336_v44  ;;  %v2677_v44 = vld [vmem:[#allocation6_spill] sm:$0xff]  ;;  %v2678_v49 = vld [vmem:[#allocation8_spill] sm:$0xff] }
  0x60   : > { %1747 = vmatpush3.bf16.msra.mxu1 %v1744_v31  ;;  %1843 = vmatpush3.bf16.msra.mxu0 %v2443_v56  ;;  %v475_v20 = vand.u32 4294901760, %v2516_v7  ;;  %v2674_v31 = vand.u32 4294901760, %v2331_v42  ;;  %v456_v27 = vand.u32 4294901760, %v455_v39  ;;  %v463_v41 = vand.u32 4294901760, %v462_v36 }
  0x61   : > { %1749 = vmatprep.subr.bf16.mxu1 %v1748_v21  ;;  %1845 = vmatprep.subr.bf16.mxu0 %v1844_v60  ;;  %v1852_v3 = vpack.c.bf16 %v447_v19, %v2675_v53 }
  0x62   : > { %v2533_v56 = vsub.f32 %v2331_v42, %v2674_v31  ;;  %1482 = vmatprep.mubr.f32.mxu1 %v345_v14  ;;  %1614 = vmatprep.mubr.f32.mxu0 %v343_v57  ;;  %v476_v42 = vsub.f32 %v2516_v7, %v475_v20  ;;  %v482_v57 = vand.u32 4294901760, %v2528_v63 }
  0x63   : > { %1483 = vmatmul.mubr.f32.gmra.mrb[4].mxu1 %v355_v47  ;;  %1615 = vmatmul.mubr.f32.gmra.mrb[4].mxu0 %v353_v16  ;;  %v470_v16 = vand.u32 4294901760, %v469_v23  ;;  %v1772_v47 = vpack.c.bf16 %v2321_v40, %v2299_v34  ;;  %v1780_v34 = vpack.c.bf16 %v2383_v1, %v2356_v52  ;;  %v2676_v40 = vld [vmem:[#allocation7_spill] sm:$0xff]  ;;  %v1796_v52 = vpack.c.bf16 %v2516_v7, %v2511_v28 }
  0x64   : > { %1751 = vmatpush3.bf16.msra.mxu1 %v1748_v21  ;;  %1847 = vmatpush3.bf16.msra.mxu0 %v1844_v60  ;;  %v489_v6 = vand.u32 4294901760, %v2533_v56  ;;  %v1760_v60 = vpack.c.bf16 %v463_v41, %v456_v27  ;;  %v477_v19 = vand.u32 4294901760, %v476_v42  ;;  %v483_v21 = vsub.f32 %v2528_v63, %v482_v57 }
  0x65   : > { %1753 = vmatprep.subr.bf16.mxu1 %v1752_v38  ;;  %1849 = vmatprep.subr.bf16.mxu0 %v1848_v54  ;;  %v1800_v1 = vpack.c.bf16 %v2533_v56, %v2528_v63 }
  0x66   : > { %1485 = vmatprep.mubr.f32.mxu1 %v365_v59  ;;  %1617 = vmatprep.mubr.f32.mxu0 %v363_v30  ;;  %v490_v14 = vsub.f32 %v2533_v56, %v489_v6  ;;  %v1764_v30 = vpack.c.bf16 %v477_v19, %v470_v16  ;;  %v1864_v37 = vpack.c.bf16 %v489_v6, %v482_v57 }
  0x67   : > { %1486 = vmatmul.mubr.f32.gmra.mrb[6].mxu1 %v375_v29  ;;  %1618 = vmatmul.mubr.f32.gmra.mrb[6].mxu0 %v373_v33  ;;  %v484_v33 = vand.u32 4294901760, %v483_v21 }
  0x68   : > { %1755 = vmatpush3.bf16.msra.mxu1 %v1752_v38  ;;  %1851 = vmatpush3.bf16.msra.mxu0 %v1848_v54  ;;  %v1860_v54 = vpack.c.bf16 %v475_v20, %v468_v35  ;;  %v491_v62 = vand.u32 4294901760, %v490_v14 }
  0x69   : > { %1757 = vmatprep.subr.bf16.mxu1 %v1756_v46  ;;  %1853 = vmatprep.subr.bf16.mxu0 %v1852_v3 }
  0x6a   : > { %1520 = vmatprep.mubr.f32.mxu1 %v2247_v17  ;;  %1652 = vmatprep.mubr.f32.mxu0 %v2247_v17  ;;  %v1768_v9 = vpack.c.bf16 %v491_v62, %v484_v33 }
  0x6c   : > { %1759 = vmatpush3.bf16.msra.mxu1 %v1756_v46  ;;  %1855 = vmatpush3.bf16.msra.mxu0 %v1852_v3 }
  0x6d   : > { %1761 = vmatprep.subr.bf16.mxu1 %v1760_v60  ;;  %1857 = vmatprep.subr.bf16.mxu0 %v1856_v48 }
  0x70   : > { %1763 = vmatpush3.bf16.msra.mxu1 %v1760_v60  ;;  %1859 = vmatpush3.bf16.msra.mxu0 %v1856_v48 }
  0x71   : > { %1765 = vmatprep.subr.bf16.mxu1 %v1764_v30  ;;  %1861 = vmatprep.subr.bf16.mxu0 %v1860_v54 }
  0x74   : > { %1767 = vmatpush3.bf16.msra.mxu1 %v1764_v30  ;;  %1863 = vmatpush3.bf16.msra.mxu0 %v1860_v54 }
  0x75   : > { %1769 = vmatprep.subr.bf16.mxu1 %v1768_v9  ;;  %1865 = vmatprep.subr.bf16.mxu0 %v1864_v37 }
  0x78   : > { %1771 = vmatpush3.bf16.msra.mxu1 %v1768_v9  ;;  %1867 = vmatpush3.bf16.msra.mxu0 %v1864_v37 }
  0x79   : > { %1773 = vmatprep.subr.bf16.mxu1 %v1772_v47  ;;  %1869 = vmatprep.subr.bf16.mxu0 %v2226_v10 }
  0x7b   : > { %1521 = vmatmul.mubr.f32.vlgmr.msra.gmra.mrb[0].mxu1 %v2295_v32  ;;  %1653 = vmatmul.mubr.f32.vlgmr.msra.gmra.mrb[0].mxu0 %v2295_v32 }
  0x7c   : > { %1775 = vmatpush3.bf16.msra.mxu1 %v1772_v47  ;;  %1871 = vmatpush3.bf16.msra.mxu0 %v2226_v10  ;;  %v1784_v10 = vpack.c.bf16 %v2417_v25, %v2408_v11  ;;  %v2681_v11 = vld [vmem:[#allocation11_spill] sm:$0xff]  ;;  %v2682_v25 = vld [vmem:[#allocation12_spill] sm:$0xff] }
  0x7d   : > { %1777 = vmatprep.subr.bf16.mxu1 %v1776_v4  ;;  %1873 = vmatprep.subr.bf16.mxu0 %v2230_v13 }
  0x7e   : > { %1523 = vmatprep.mubr.f32.mxu1 %v2360_v55  ;;  %1655 = vmatprep.mubr.f32.mxu0 %v2360_v55 }
  0x7f   : > { %1524 = vmatmul.mubr.f32.gmra.mrb[2].mxu1 %v2385_v2  ;;  %1656 = vmatmul.mubr.f32.gmra.mrb[2].mxu0 %v2385_v2 }
  0x80   : > { %1779 = vmatpush3.bf16.msra.mxu1 %v1776_v4  ;;  %1875 = vmatpush3.bf16.msra.mxu0 %v2230_v13  ;;  %v1788_v13 = vpack.c.bf16 %v2456_v58, %v2435_v15  ;;  %v2683_v15 = vld [vmem:[#allocation13_spill] sm:$0xff]  ;;  %v2684_v58 = vld [vmem:[#allocation14_spill] sm:$0xff] }
  0x81   : > { %1781 = vmatprep.subr.bf16.mxu1 %v1780_v34  ;;  %1877 = vmatprep.subr.bf16.mxu0 %v2253_v18 }
  0x82   : > { %1526 = vmatprep.mubr.f32.mxu1 %v2396_v5  ;;  %1658 = vmatprep.mubr.f32.mxu0 %v2396_v5 }
  0x83   : > { %1527 = vmatmul.mubr.f32.gmra.mrb[4].mxu1 %v2430_v45  ;;  %1659 = vmatmul.mubr.f32.gmra.mrb[4].mxu0 %v2430_v45 }
  0x84   : > { %1783 = vmatpush3.bf16.msra.mxu1 %v1780_v34  ;;  %1879 = vmatpush3.bf16.msra.mxu0 %v2253_v18  ;;  %v1792_v18 = vpack.c.bf16 %v2486_v8, %v2481_v12 }
  0x85   : > { %1785 = vmatprep.subr.bf16.mxu1 %v1784_v10  ;;  %1881 = vmatprep.subr.bf16.mxu0 %v2280_v26 }
  0x86   : > { %1529 = vmatprep.mubr.f32.mxu1 %v2441_v51  ;;  %1661 = vmatprep.mubr.f32.mxu0 %v2441_v51 }
  0x87   : > { %1530 = vmatmul.mubr.f32.gmra.mrb[6].mxu1 %v2472_v24  ;;  %1662 = vmatmul.mubr.f32.gmra.mrb[6].mxu0 %v2472_v24 }
  0x88   : > { %1787 = vmatpush3.bf16.msra.mxu1 %v1784_v10  ;;  %1883 = vmatpush3.bf16.msra.mxu0 %v2280_v26  ;;  %v2679_v26 = vld [vmem:[#allocation9_spill] sm:$0xff] }
  0x89   : > { %1789 = vmatprep.subr.bf16.mxu1 %v1788_v13  ;;  %1885 = vmatprep.subr.bf16.mxu0 %v2676_v40 }
  0x8a   : > { %1564 = vmatprep.mubr.f32.mxu1 %v2677_v44  ;;  %1696 = vmatprep.mubr.f32.mxu0 %v2247_v17  ;;  %v2680_v17 = vld [vmem:[#allocation10_spill] sm:$0xff] }
  0x8c   : > { %1791 = vmatpush3.bf16.msra.mxu1 %v1788_v13  ;;  %1887 = vmatpush3.bf16.msra.mxu0 %v2676_v40 }
  0x8d   : > { %1793 = vmatprep.subr.bf16.mxu1 %v1792_v18  ;;  %1889 = vmatprep.subr.bf16.mxu0 %v2678_v49 }
  0x90   : > { %1795 = vmatpush3.bf16.msra.mxu1 %v1792_v18  ;;  %1891 = vmatpush3.bf16.msra.mxu0 %v2678_v49 }
  0x91   : > { %1797 = vmatprep.subr.bf16.mxu1 %v1796_v52  ;;  %1893 = vmatprep.subr.bf16.mxu0 %v2679_v26 }
  0x94   : > { %1799 = vmatpush3.bf16.msra.mxu1 %v1796_v52  ;;  %1895 = vmatpush3.bf16.msra.mxu0 %v2679_v26 }
  0x95   : > { %1801 = vmatprep.subr.bf16.mxu1 %v1800_v1  ;;  %1897 = vmatprep.subr.bf16.mxu0 %v2680_v17 }
  0x98   : > { %1803 = vmatpush3.bf16.msra.mxu1 %v1800_v1  ;;  %1899 = vmatpush3.bf16.msra.mxu0 %v2680_v17 }
  0x9b   : > { %1565 = vmatmul.mubr.f32.vlgmr.msra.gmra.mrb[0].mxu1 %v2334_v43  ;;  %1697 = vmatmul.mubr.f32.vlgmr.msra.gmra.mrb[0].mxu0 %v2295_v32  ;;  %v219_v32 = vstv %s218_s27 }
  0x9c   : > { %1567 = vmatprep.mubr.f32.mxu1 %v2681_v11  ;;  %1699 = vmatprep.mubr.f32.mxu0 %v2360_v55 }
  0x9f   : > { %1568 = vmatmul.mubr.f32.gmra.mrb[2].mxu1 %v2682_v25  ;;  %1700 = vmatmul.mubr.f32.gmra.mrb[2].mxu0 %v2385_v2 }
  0xa0   : > { %1570 = vmatprep.mubr.f32.mxu1 %v2683_v15  ;;  %1702 = vmatprep.mubr.f32.mxu0 %v2396_v5 }
  0xa3   : > { %1571 = vmatmul.mubr.f32.gmra.mrb[4].mxu1 %v2684_v58  ;;  %1703 = vmatmul.mubr.f32.gmra.mrb[4].mxu0 %v2430_v45 }
  0xa4   : > { %1573 = vmatprep.mubr.f32.mxu1 %v2467_v22  ;;  %1705 = vmatprep.mubr.f32.mxu0 %v2441_v51 }
  0xa7   : > { %1574 = vmatmul.mubr.f32.gmra.mrb[6].mxu1 %v2492_v50  ;;  %1706 = vmatmul.mubr.f32.gmra.mrb[6].mxu0 %v2472_v24 }
 0x16e   : > { %v1566_v43 = vpop.f32.mrb[0].mxu1  ;;  %v1698_v55 = vpop.f32.mrb[0].mxu0 }
 0x16f   : > { %v1900_v2 = vadd.f32 %v1566_v43, %v219_v32  ;;  %v674_v8 = vpop.f32.mrb[1].mxu1  ;;  %v1116_v12 = vpop.f32.mrb[1].mxu0 }
 0x170   : > { %v1902_v5 = vadd.f32 %v674_v8, %v219_v32 }
 0x171   : > { %v1901_v28 = vadd.f32 %v1900_v2, %v1698_v55 }
 0x172   : > { %v1903_v7 = vadd.f32 %v1902_v5, %v1116_v12  ;;  %v1569_v38 = vpop.f32.mrb[2].mxu1  ;;  %v1701_v45 = vpop.f32.mrb[2].mxu0 }
 0x173   : > { %v1163_v0 = vsub.f32 0.0, %v1901_v28  ;;  %v1904_v22 = vadd.f32 %v1569_v38, %v219_v32  ;;  %v688_v39 = vpop.f32.mrb[3].mxu1  ;;  %v1128_v51 = vpop.f32.mrb[3].mxu0 }
 0x174   : > { %v1162_v36 = vsub.f32 0.0, %v1903_v7  ;;  %v1906_v50 = vadd.f32 %v688_v39, %v219_v32 }
 0x175   : > { %v1172_v35 = vmul.f32 1.442695, %v1163_v0  ;;  %v1905_v24 = vadd.f32 %v1904_v22, %v1701_v45 }
 0x176   : > { %v1170_v20 = vmul.f32 1.442695, %v1162_v36  ;;  %v1907_v61 = vadd.f32 %v1906_v50, %v1128_v51  ;;  %v1572_v63 = vpop.f32.mrb[4].mxu1  ;;  %v1704_v31 = vpop.f32.mrb[4].mxu0 }
 0x177   : > { %1989 = vpow2.f32 %v1172_v35  ;;  %v1165_v56 = vsub.f32 0.0, %v1905_v24  ;;  %v1908_v59 = vadd.f32 %v1572_v63, %v219_v32  ;;  %v702_v29 = vpop.f32.mrb[5].mxu1  ;;  %v1140_v46 = vpop.f32.mrb[5].mxu0 }
 0x178   : > { %1991 = vpow2.f32 %v1170_v20  ;;  %v1164_v53 = vsub.f32 0.0, %v1907_v61  ;;  %v1910_v3 = vadd.f32 %v702_v29, %v219_v32 }
 0x179   : > { %v1176_v27 = vmul.f32 1.442695, %v1165_v56  ;;  %v1909_v41 = vadd.f32 %v1908_v59, %v1704_v31 }
 0x17a   : > { %v1174_v23 = vmul.f32 1.442695, %v1164_v53  ;;  %v1911_v42 = vadd.f32 %v1910_v3, %v1140_v46  ;;  %v1575_v57 = vpop.f32.mrb[6].mxu1  ;;  %v1707_v6 = vpop.f32.mrb[6].mxu0 }
 0x17b   : > { %1993 = vpow2.f32 %v1176_v27  ;;  %v1167_v60 = vsub.f32 0.0, %v1909_v41  ;;  %v1912_v48 = vadd.f32 %v1575_v57, %v219_v32  ;;  %v716_v16 = vpop.f32.mrb[7].mxu1  ;;  %v1152_v19 = vpop.f32.mrb[7].mxu0 }
 0x17c   : > { %1995 = vpow2.f32 %v1174_v23  ;;  %v1166_v21 = vsub.f32 0.0, %v1911_v42  ;;  %v1914_v14 = vadd.f32 %v716_v16, %v219_v32 }
 0x17d   : > { %v1180_v30 = vmul.f32 1.442695, %v1167_v60  ;;  %v1913_v54 = vadd.f32 %v1912_v48, %v1707_v6 }
 0x17e   : > { %v1178_v33 = vmul.f32 1.442695, %v1166_v21  ;;  %v1915_v62 = vadd.f32 %v1914_v14, %v1152_v19 }
 0x17f   : > { %1997 = vpow2.f32 %v1180_v30  ;;  %v1169_v9 = vsub.f32 0.0, %v1913_v54 }
 0x180   : > { %1999 = vpow2.f32 %v1178_v33  ;;  %v1168_v37 = vsub.f32 0.0, %v1915_v62 }
 0x181   : > { %v1990_v47 = vpop.eup %1989  ;;  %v1184_v4 = vmul.f32 1.442695, %v1169_v9 }
 0x182   : > { %v1992_v34 = vpop.eup %1991  ;;  %v1187_v10 = vadd.f32 1.0, %v1990_v47  ;;  %v1182_v13 = vmul.f32 1.442695, %v1168_v37 }
 0x183   : > { %v1186_v40 = vadd.f32 1.0, %v1992_v34  ;;  %2001 = vpow2.f32 %v1184_v4 }
 0x184   : > { %2003 = vrcp.f32 %v1187_v10 }
 0x185   : > { %v1994_v18 = vpop.eup %1993  ;;  %2005 = vrcp.f32 %v1186_v40 }
 0x186   : > { %v1996_v44 = vpop.eup %1995  ;;  %v1189_v49 = vadd.f32 1.0, %v1994_v18  ;;  %2007 = vpow2.f32 %v1182_v13 }
 0x187   : > { %v1188_v52 = vadd.f32 1.0, %v1996_v44 }
 0x188   : > { %2009 = vrcp.f32 %v1189_v49 }
 0x189   : > { %v1998_v26 = vpop.eup %1997  ;;  %2011 = vrcp.f32 %v1188_v52 }
 0x18a   : > { %v2000_v1 = vpop.eup %1999  ;;  %v1191_v17 = vadd.f32 1.0, %v1998_v26 }
 0x18b   : > { %v1190_v11 = vadd.f32 1.0, %v2000_v1 }
 0x18c   : > { %2013 = vrcp.f32 %v1191_v17 }
 0x18d   : > { %v2002_v25 = vpop.eup %2001  ;;  %2015 = vrcp.f32 %v1190_v11 }
 0x18e   : > { %v2004_v15 = vpop.eup %2003  ;;  %v1193_v58 = vadd.f32 1.0, %v2002_v25 }
 0x18f   : > { %v2006_v32 = vpop.eup %2005  ;;  %1212 = vst.msk [vmem:[%s192_s13 + $0x8] sm:$0xff] %vm1210_vm0, %v2004_v15 }
 0x190   : > { %v2008_v43 = vpop.eup %2007  ;;  %1211 = vst.msk [vmem:[%s192_s13] sm:$0xff] %vm1210_vm0, %v2006_v32  ;;  %2017 = vrcp.f32 %v1193_v58 }
 0x191   : > { %v1192_v55 = vadd.f32 1.0, %v2008_v43 }
 0x192   : > { %v2010_v2 = vpop.eup %2009 }
 0x193   : > { %v2012_v8 = vpop.eup %2011  ;;  %1214 = vst.msk [vmem:[%s192_s13 + $0x18] sm:$0xff] %vm1210_vm0, %v2010_v2  ;;  %2019 = vrcp.f32 %v1192_v55 }
 0x194   : > { %1213 = vst.msk [vmem:[%s192_s13 + $0x10] sm:$0xff] %vm1210_vm0, %v2012_v8 }
 0x196   : > { %v2014_v12 = vpop.eup %2013 }
 0x197   : > { %v2016_v5 = vpop.eup %2015  ;;  %1216 = vst.msk [vmem:[%s192_s13 + $0x28] sm:$0xff] %vm1210_vm0, %v2014_v12 }
 0x198   : > { %1215 = vst.msk [vmem:[%s192_s13 + $0x20] sm:$0xff] %vm1210_vm0, %v2016_v5 }
 0x19a   : > { %v2018_v28 = vpop.eup %2017 }
 0x19b   : > { %1218 = vst.msk [vmem:[%s192_s13 + $0x38] sm:$0xff] %vm1210_vm0, %v2018_v28 }
 0x19d   : > { %v2020_v7 = vpop.eup %2019 }
 0x19e   : > { %1217 = vst.msk [vmem:[%s192_s13 + $0x30] sm:$0xff] %vm1210_vm0, %v2020_v7 }
 0x19f PF: > { %p14_p8 = scmp.ge.s32.totalorder %s2133_s18, 6   ;;  %s2685_s14 = smov %s2077_s15 }
 0x1a0   : > { %s2686_s15 = smov %s2081_s16  ;;  %s2687_s16 = smov %s2143_s21 }
 0x1a1   : > { %s2688_s17 = smov %s2133_s18  ;;  %16 = sbr.rel (!%p14_p8) target bundleno = 5 (0x5), region = 72 }
 0x1a8   :  { %1241 = vsyncpa [#allocation4], 1 }
 0x1a9   :  { %1243 = vsyncpa [#allocation4 + $0x1], 1 }

</bundles_post_ra>
